<compile_context>
chip_gen: v6e
topology: v6e:2x2x1
jax: 0.10.0
libtpu: 0.0.40
codegen_flags: <defaults>
</compile_context>

<pallas_src>
import functools

import jax
import jax.numpy as jnp
import numpy as np
from jax.experimental import pallas as pl
from jax.experimental.pallas import tpu as pltpu


_MIN_VMEM = 32 << 20   # above the 16 MiB (v5e) / 32 MiB (v6e/v7x) defaults
_MAX_VMEM = 64 << 20   # do not exceed v7x's 64 MiB physical VMEM


def _vmem_limit(nbytes, headroom=1.5):
    return int(max(_MIN_VMEM, min(_MAX_VMEM, nbytes * headroom)))


def _ceil_to(x, m):
    return -(-x // m) * m


# --------------------------------------------------------------------------
# Kernel 1: K/V projection, once per batch element.
# --------------------------------------------------------------------------
def _kv_project_kernel(xk_ref, xv_ref, wk_ref, bk_ref, wv_ref, bv_ref,
                       kt_ref, v_ref):
    # K projection; written back transposed (one XLU transpose per batch) so
    # the attention kernel's QK^T needs no per-head/per-tile transpose.
    k = jnp.dot(xk_ref[0].astype(jnp.bfloat16), wk_ref[...],
                preferred_element_type=jnp.float32) + bk_ref[...]
    kt_ref[0] = k.T.astype(jnp.bfloat16)

    # V projection written directly into its output (no stacked temporary).
    v = jnp.dot(xv_ref[0].astype(jnp.bfloat16), wv_ref[...],
                preferred_element_type=jnp.float32) + bv_ref[...]
    v_ref[0] = v.astype(jnp.bfloat16)


# --------------------------------------------------------------------------
# Kernel 2: Q projection + per-head attention over (batch, query-tile) grid.
# --------------------------------------------------------------------------
def _attention_kernel(xq_ref, kt_ref, v_ref, wq_ref, bq_ref, o_ref, q_scr,
                      *, num_heads, d_k, inv_temperature):
    # Q projection for this (batch, q-tile); temperature folded into q so the
    # (q_tile, Skv) scores never need an elementwise rescale.
    q = jnp.dot(xq_ref[0].astype(jnp.bfloat16), wq_ref[...],
                preferred_element_type=jnp.float32) + bq_ref[...]
    q_scr[...] = (q * jnp.float32(inv_temperature)).astype(jnp.bfloat16)

    outs = []
    for h in range(num_heads):
        lo = h * d_k
        qh = q_scr[:, lo:lo + d_k]              # (tq,  d_k)  bf16 (ref slice)
        kth = kt_ref[0, lo:lo + d_k, :]         # (d_k, Skv)  bf16 (ref slice)

        # scores: plain MXU matmul, f32 accumulation.
        s = jnp.dot(qh, kth, preferred_element_type=jnp.float32)  # (tq, Skv)

        # Softmax in f32 (v5e VPU/EUP have no bf16).
        m = jnp.max(s, axis=-1, keepdims=True)
        e = jnp.exp(s - m)
        den = jnp.sum(e, axis=-1, keepdims=True)
        inv = pl.reciprocal(den, approx=True)       # EUP slot (nearly free)
        inv = inv * (2.0 - den * inv)               # Newton step -> ~f32 exact
        p = (e * inv).astype(jnp.bfloat16)

        vh = v_ref[0, :, lo:lo + d_k]               # (Skv, d_k) bf16 (ref slice)
        outs.append(jnp.dot(p, vh, preferred_element_type=jnp.float32))

    # One lane-dense (q_tile, D) store instead of H masked sub-lane stores.
    o_ref[0] = jnp.concatenate(outs, axis=-1).astype(o_ref.dtype)


# --------------------------------------------------------------------------
# Wrapper
# --------------------------------------------------------------------------
def multi_head_attention(query, key, value, params, *, num_heads,
                         temperature=1.0, q_tile=None):
    """query: (B, Sq, D); key/value: (B, Skv, D); all float32.
    params: Wq,Wk,Wv stored as (d_in, d_out) (== PyTorch weight.T), b*: (1, D)."""
    B, Sq, D = query.shape
    _, Skv, _ = key.shape
    assert D % num_heads == 0
    d_k = D // num_heads

    # Query tile: a multiple of 8 sublanes, capped at 512; pad Sq up to a
    # multiple of it (padded query rows produce throwaway rows that are sliced
    # off; they cannot perturb valid rows since softmax is per query row).
    if q_tile is None:
        q_tile = min(512, _ceil_to(Sq, 8))
    q_tile = _ceil_to(q_tile, 8)
    Sq_pad = _ceil_to(Sq, q_tile)
    nq = Sq_pad // q_tile
    if Sq_pad != Sq:
        query = jnp.pad(query, ((0, 0), (0, Sq_pad - Sq), (0, 0)))

    f32, bf16 = jnp.float32, jnp.bfloat16
    wq = params["Wq"].astype(bf16)
    wk = params["Wk"].astype(bf16)
    wv = params["Wv"].astype(bf16)
    bq = params["bq"].astype(f32)
    bk = params["bk"].astype(f32)
    bv = params["bv"].astype(f32)

    def run(single_buffer_consts):
        const_kw = ({"pipeline_mode": pl.Buffered(1)}
                    if single_buffer_consts else {})

        def const_spec(shape):
            nd = len(shape)
            # Constant operands: index_map never changes -> single-buffer them.
            return pl.BlockSpec(shape, lambda *idx: (0,) * nd, **const_kw)

        # ---------------- K/V projection call (grid over batch) ------------
        proj_bytes = (2 * 2 * Skv * D * 4          # xk/xv blocks, double-buffered
                      + 2 * 2 * Skv * D * 2        # kT / V output blocks (bf16)
                      + 2 * D * D * 2 + 2 * D * 4  # weights (bf16) + biases
                      + 2 * Skv * D * 4)           # f32 projection temporaries
        kv_proj = pl.pallas_call(
            _kv_project_kernel,
            out_shape=(jax.ShapeDtypeStruct((B, D, Skv), bf16),    # K^T
                       jax.ShapeDtypeStruct((B, Skv, D), bf16)),   # V
            grid_spec=pltpu.PrefetchScalarGridSpec(
                num_scalar_prefetch=0,
                grid=(B,),
                in_specs=[
                    pl.BlockSpec((1, Skv, D), lambda b: (b, 0, 0)),
                    pl.BlockSpec((1, Skv, D), lambda b: (b, 0, 0)),
                    const_spec((D, D)), const_spec((1, D)),
                    const_spec((D, D)), const_spec((1, D)),
                ],
                out_specs=[
                    pl.BlockSpec((1, D, Skv), lambda b: (b, 0, 0)),
                    pl.BlockSpec((1, Skv, D), lambda b: (b, 0, 0)),
                ]),
            compiler_params=pltpu.CompilerParams(
                dimension_semantics=("parallel",),
                vmem_limit_bytes=_vmem_limit(proj_bytes)),
        )

        # ---------------- attention call (grid over batch x q-tiles) -------
        attn_bytes = (2 * q_tile * D * 4           # query blocks (dbl-buffered)
                      + 2 * q_tile * D * 4         # output blocks
                      + 2 * D * Skv * 2            # K^T blocks (bf16)
                      + 2 * Skv * D * 2            # V blocks (bf16)
                      + D * D * 2 + D * 4          # Wq (bf16) + bq
                      + q_tile * D * 2             # q scratch (bf16)
                      + 3 * q_tile * Skv * 4)      # per-head s/e/p temporaries
        kernel = functools.partial(
            _attention_kernel, num_heads=num_heads, d_k=d_k,
            inv_temperature=1.0 / float(temperature))
        attn = pl.pallas_call(
            kernel,
            out_shape=jax.ShapeDtypeStruct((B, Sq_pad, D), f32),
            grid_spec=pltpu.PrefetchScalarGridSpec(
                num_scalar_prefetch=0,
                grid=(B, nq),
                in_specs=[
                    pl.BlockSpec((1, q_tile, D), lambda b, qt: (b, qt, 0)),
                    # K^T / V: full per-batch blocks; index depends only on b,
                    # so they are DMA'd once per batch element.
                    pl.BlockSpec((1, D, Skv), lambda b, qt: (b, 0, 0)),
                    pl.BlockSpec((1, Skv, D), lambda b, qt: (b, 0, 0)),
                    const_spec((D, D)),        # Wq (bf16)
                    const_spec((1, D)),        # bq (f32)
                ],
                out_specs=pl.BlockSpec((1, q_tile, D),
                                       lambda b, qt: (b, qt, 0)),
                scratch_shapes=[pltpu.VMEM((q_tile, D), bf16)]),
            compiler_params=pltpu.CompilerParams(
                # No state carried across either grid axis (K/V projection is
                # hoisted), so both axes are "parallel" (megacore on v7x).
                dimension_semantics=("parallel", "parallel"),
                vmem_limit_bytes=_vmem_limit(attn_bytes)),
        )

        kt, v = kv_proj(key, value, wk, bk, wv, bv)
        out = attn(query, kt, v, wq, bq)
        return out[:, :Sq, :]

    try:
        return run(True)
    except (pltpu.LoweringException, TypeError, NotImplementedError,
            ValueError):
        # Installed Mosaic/JAX rejected single-buffered (pl.Buffered(1))
        # constant specs; retry with default double-buffered constants. Any
        # unrelated error reproduces here and propagates normally.
        return run(False)


# --------------------------------------------------------------------------
# Plain-JAX replica of the PyTorch forward (eval mode) for checking.
# --------------------------------------------------------------------------
def _reference(query, key, value, params, *, num_heads, temperature=1.0):
    B, Sq, D = query.shape
    d_k = D // num_heads

    def proj(x, W, b):
        return x @ W + b

    def split(x):  # (B,S,D) -> (B,H,S,d_k)
        b_, s_, _ = x.shape
        return x.reshape(b_, s_, num_heads, d_k).transpose(0, 2, 1, 3)

    q = split(proj(query, params["Wq"], params["bq"]))
    k = split(proj(key, params["Wk"], params["bk"]))
    v = split(proj(value, params["Wv"], params["bv"]))

    scores = jnp.einsum("bhqd,bhkd->bhqk", q, k) / temperature
    p = jax.nn.softmax(scores, axis=-1)
    out = jnp.einsum("bhqk,bhkd->bhqd", p, v)
    return out.transpose(0, 2, 1, 3).reshape(B, Sq, D)


if __name__ == "__main__":
    # Small shapes consistent with the module: batch=2, seq=8, d_model=32, h=4.
    B, S, D, H = 2, 8, 32, 4

    key0 = jax.random.PRNGKey(0)
    ks = jax.random.split(key0, 9)
    bound = 1.0 / np.sqrt(D)

    def init_w(k):  # stored directly as (d_in, d_out) == PyTorch weight.T
        return jax.random.uniform(k, (D, D), jnp.float32, -bound, bound)

    def init_b(k):
        return jax.random.uniform(k, (1, D), jnp.float32, -bound, bound)

    params = {
        "Wq": init_w(ks[0]), "bq": init_b(ks[1]),
        "Wk": init_w(ks[2]), "bk": init_b(ks[3]),
        "Wv": init_w(ks[4]), "bv": init_b(ks[5]),
    }

    query = jax.random.normal(ks[6], (B, S, D), jnp.float32)
    key_in = jax.random.normal(ks[7], (B, S, D), jnp.float32)
    value = jax.random.normal(ks[8], (B, S, D), jnp.float32)

    out = multi_head_attention(query, key_in, value, params,
                               num_heads=H, temperature=1.0)
    out = jax.block_until_ready(out)
    ref = _reference(query, key_in, value, params, num_heads=H,
                     temperature=1.0)
    # bf16 MXU operands (f32 accumulation) -> tolerance relaxed vs pure f32.
    np.testing.assert_allclose(np.asarray(out), np.asarray(ref),
                               rtol=2e-2, atol=2e-2)

    # Second case: multi-q-tile grid, non-divisible Sq (host padding path),
    # cross-attention-style Skv != Sq, and temperature != 1 (fold into q).
    S2q, S2kv = 24, 48
    q2 = jax.random.normal(jax.random.PRNGKey(1), (B, S2q, D), jnp.float32)
    k2 = jax.random.normal(jax.random.PRNGKey(2), (B, S2kv, D), jnp.float32)
    v2 = jax.random.normal(jax.random.PRNGKey(3), (B, S2kv, D), jnp.float32)
    out2 = multi_head_attention(q2, k2, v2, params, num_heads=H,
                                temperature=2.0, q_tile=16)
    out2 = jax.block_until_ready(out2)
    ref2 = _reference(q2, k2, v2, params, num_heads=H, temperature=2.0)
    np.testing.assert_allclose(np.asarray(out2), np.asarray(ref2),
                               rtol=2e-2, atol=2e-2)

    print("KERNEL_OK")
</pallas_src>

<mosaic_0001>
module attributes {stable_mosaic.version = 11 : i64} {
  func.func @_kv_project_kernel(%arg0: i32, %arg1: memref<1x8x32xf32, #tpu.memory_space<vmem>>, %arg2: memref<1x8x32xf32, #tpu.memory_space<vmem>>, %arg3: memref<32x32xbf16, #tpu.memory_space<vmem>>, %arg4: memref<1x32xf32, #tpu.memory_space<vmem>>, %arg5: memref<32x32xbf16, #tpu.memory_space<vmem>>, %arg6: memref<1x32xf32, #tpu.memory_space<vmem>>, %arg7: memref<1x32x8xbf16, #tpu.memory_space<vmem>>, %arg8: memref<1x8x32xbf16, #tpu.memory_space<vmem>>) attributes {dimension_semantics = [#tpu.dimension_semantics<parallel>], iteration_bounds = array<i64: 2>, scalar_prefetch = 0 : i64, scratch_operands = 0 : i64, tpu.core_type = #tpu.core_type<tc>, window_params = [{transform_indices = @transform_0, window_bounds = array<i64: 1, 8, 32>}, {transform_indices = @transform_1, window_bounds = array<i64: 1, 8, 32>}, {pipeline_mode = #tpu.pipeline_mode<synchronous>, transform_indices = @transform_2, window_bounds = array<i64: 32, 32>}, {pipeline_mode = #tpu.pipeline_mode<synchronous>, transform_indices = @transform_3, window_bounds = array<i64: 1, 32>}, {pipeline_mode = #tpu.pipeline_mode<synchronous>, transform_indices = @transform_4, window_bounds = array<i64: 32, 32>}, {pipeline_mode = #tpu.pipeline_mode<synchronous>, transform_indices = @transform_5, window_bounds = array<i64: 1, 32>}, {transform_indices = @transform_6, window_bounds = array<i64: 1, 32, 8>}, {transform_indices = @transform_7, window_bounds = array<i64: 1, 8, 32>}]} {
    %c0 = arith.constant 0 : index
    %c0_0 = arith.constant 0 : index
    %c0_1 = arith.constant 0 : index
    %0 = vector.load %arg1[%c0, %c0_0, %c0_1] : memref<1x8x32xf32, #tpu.memory_space<vmem>>, vector<1x8x32xf32>
    %1 = vector.shape_cast %0 : vector<1x8x32xf32> to vector<8x32xf32>
    %2 = arith.truncf %1 : vector<8x32xf32> to vector<8x32xbf16>
    %c0_2 = arith.constant 0 : index
    %c0_3 = arith.constant 0 : index
    %3 = vector.load %arg3[%c0_2, %c0_3] : memref<32x32xbf16, #tpu.memory_space<vmem>>, vector<32x32xbf16>
    %cst = arith.constant dense<0.000000e+00> : vector<8x32xf32>
    %4 = tpu.matmul %2, %3, %cst {dimension_numbers = #tpu.dot_dimension_numbers<[1], [0], [0], [1], [0, 0, 1, 1], [], []>} : vector<8x32xbf16>, vector<32x32xbf16>, vector<8x32xf32> -> vector<8x32xf32>
    %c0_4 = arith.constant 0 : index
    %c0_5 = arith.constant 0 : index
    %5 = vector.load %arg4[%c0_4, %c0_5] : memref<1x32xf32, #tpu.memory_space<vmem>>, vector<1x32xf32>
    %6 = vector.broadcast %5 : vector<1x32xf32> to vector<8x32xf32>
    %7 = arith.addf %4, %6 : vector<8x32xf32>
    %8 = tpu.transpose %7, [1, 0] : vector<8x32xf32> -> vector<32x8xf32>
    %9 = arith.truncf %8 : vector<32x8xf32> to vector<32x8xbf16>
    %c0_6 = arith.constant 0 : index
    %c0_7 = arith.constant 0 : index
    %c0_8 = arith.constant 0 : index
    %10 = vector.load %arg7[%c0_6, %c0_7, %c0_8] : memref<1x32x8xbf16, #tpu.memory_space<vmem>>, vector<1x32x8xbf16>
    %11 = vector.shape_cast %10 : vector<1x32x8xbf16> to vector<32x8xbf16>
    %12 = vector.shape_cast %9 : vector<32x8xbf16> to vector<1x32x8xbf16>
    tpu.vector_store %arg7[%c0_6, %c0_7, %c0_8], %12 {strides = array<i32>} : memref<1x32x8xbf16, #tpu.memory_space<vmem>>, vector<1x32x8xbf16>,
    %c0_9 = arith.constant 0 : index
    %c0_10 = arith.constant 0 : index
    %c0_11 = arith.constant 0 : index
    %13 = vector.load %arg2[%c0_9, %c0_10, %c0_11] : memref<1x8x32xf32, #tpu.memory_space<vmem>>, vector<1x8x32xf32>
    %14 = vector.shape_cast %13 : vector<1x8x32xf32> to vector<8x32xf32>
    %15 = arith.truncf %14 : vector<8x32xf32> to vector<8x32xbf16>
    %c0_12 = arith.constant 0 : index
    %c0_13 = arith.constant 0 : index
    %16 = vector.load %arg5[%c0_12, %c0_13] : memref<32x32xbf16, #tpu.memory_space<vmem>>, vector<32x32xbf16>
    %cst_14 = arith.constant dense<0.000000e+00> : vector<8x32xf32>
    %17 = tpu.matmul %15, %16, %cst_14 {dimension_numbers = #tpu.dot_dimension_numbers<[1], [0], [0], [1], [0, 0, 1, 1], [], []>} : vector<8x32xbf16>, vector<32x32xbf16>, vector<8x32xf32> -> vector<8x32xf32>
    %c0_15 = arith.constant 0 : index
    %c0_16 = arith.constant 0 : index
    %18 = vector.load %arg6[%c0_15, %c0_16] : memref<1x32xf32, #tpu.memory_space<vmem>>, vector<1x32xf32>
    %19 = vector.broadcast %18 : vector<1x32xf32> to vector<8x32xf32>
    %20 = arith.addf %17, %19 : vector<8x32xf32>
    %21 = arith.truncf %20 : vector<8x32xf32> to vector<8x32xbf16>
    %c0_17 = arith.constant 0 : index
    %c0_18 = arith.constant 0 : index
    %c0_19 = arith.constant 0 : index
    %22 = vector.load %arg8[%c0_17, %c0_18, %c0_19] : memref<1x8x32xbf16, #tpu.memory_space<vmem>>, vector<1x8x32xbf16>
    %23 = vector.shape_cast %22 : vector<1x8x32xbf16> to vector<8x32xbf16>
    %24 = vector.shape_cast %21 : vector<8x32xbf16> to vector<1x8x32xbf16>
    tpu.vector_store %arg8[%c0_17, %c0_18, %c0_19], %24 {strides = array<i32>} : memref<1x8x32xbf16, #tpu.memory_space<vmem>>, vector<1x8x32xbf16>,
    return
  }
  func.func @transform_0(%arg0: i32) -> (i32, i32, i32) {
    %c0_i32 = arith.constant 0 : i32
    %c0_i32_0 = arith.constant 0 : i32
    %c0_i32_1 = arith.constant 0 : i32
    return %arg0, %c0_i32, %c0_i32_0 : i32, i32, i32
  }
  func.func @transform_1(%arg0: i32) -> (i32, i32, i32) {
    %c0_i32 = arith.constant 0 : i32
    %c0_i32_0 = arith.constant 0 : i32
    %c0_i32_1 = arith.constant 0 : i32
    return %arg0, %c0_i32, %c0_i32_0 : i32, i32, i32
  }
  func.func @transform_2(%arg0: i32) -> (i32, i32) {
    %c0_i32 = arith.constant 0 : i32
    %c0_i32_0 = arith.constant 0 : i32
    %c0_i32_1 = arith.constant 0 : i32
    return %c0_i32, %c0_i32_0 : i32, i32
  }
  func.func @transform_3(%arg0: i32) -> (i32, i32) {
    %c0_i32 = arith.constant 0 : i32
    %c0_i32_0 = arith.constant 0 : i32
    %c0_i32_1 = arith.constant 0 : i32
    return %c0_i32, %c0_i32_0 : i32, i32
  }
  func.func @transform_4(%arg0: i32) -> (i32, i32) {
    %c0_i32 = arith.constant 0 : i32
    %c0_i32_0 = arith.constant 0 : i32
    %c0_i32_1 = arith.constant 0 : i32
    return %c0_i32, %c0_i32_0 : i32, i32
  }
  func.func @transform_5(%arg0: i32) -> (i32, i32) {
    %c0_i32 = arith.constant 0 : i32
    %c0_i32_0 = arith.constant 0 : i32
    %c0_i32_1 = arith.constant 0 : i32
    return %c0_i32, %c0_i32_0 : i32, i32
  }
  func.func @transform_6(%arg0: i32) -> (i32, i32, i32) {
    %c0_i32 = arith.constant 0 : i32
    %c0_i32_0 = arith.constant 0 : i32
    %c0_i32_1 = arith.constant 0 : i32
    return %arg0, %c0_i32, %c0_i32_0 : i32, i32, i32
  }
  func.func @transform_7(%arg0: i32) -> (i32, i32, i32) {
    %c0_i32 = arith.constant 0 : i32
    %c0_i32_0 = arith.constant 0 : i32
    %c0_i32_1 = arith.constant 0 : i32
    return %arg0, %c0_i32, %c0_i32_0 : i32, i32, i32
  }
}

</mosaic_0001>

<bundles_post_ra>
// kernel: tpu_custom_call.1
= control target key start
LH: loop header
LB: loop body
LE: loop exit
PB: predicated region body
PF: predicated region fallthrough
CT: control target
= control target key end

     0   :  { %s1329_s0 = inlined_call_operand.hbm [shape: f32[2,8,32], index: 0, kind: input, shape index: {}]   ;;  %s1330_s1 = inlined_call_operand.hbm [shape: f32[2,8,32], index: 1, kind: input, shape index: {}]   ;;  %s1331_s2 = inlined_call_operand.hbm [shape: bf16[32,32], index: 2, kind: input, shape index: {}]   ;;  %s1332_s3 = inlined_call_operand.vmem [shape: f32[1,32], index: 3, kind: input, shape index: {}]   ;;  %s1333_s4 = inlined_call_operand.hbm [shape: bf16[32,32], index: 4, kind: input, shape index: {}]   ;;  %s1334_s5 = inlined_call_operand.vmem [shape: f32[1,32], index: 5, kind: input, shape index: {}]   ;;  %s1335_s6 = inlined_call_operand.vmem [shape: bf16[2,32,8], index: 6, kind: output, shape index: {0}]   ;;  %s1336_s7 = inlined_call_operand.hbm [shape: bf16[2,8,32], index: 7, kind: output, shape index: {1}]  }
   0x1   :  { %1342 = sst [smem:[#allocation18_spill]] %s1331_s2 }
   0x2   :  { %1343 = sst [smem:[#allocation19_spill]] %s1333_s4 }
   0x3   :  { %13 = vsyncpa [#allocation3], 0 }
   0x4   :  { %15 = vsyncpa [#allocation3 + $0x1], 0 }
   0x5   :  { %16 = vsyncpa [#allocation6], 0 }
   0x6   :  { %18 = vsyncpa [#allocation6 + $0x1], 0 }
   0x7   :  { %19 = vsyncpa [#allocation9], 0 }
   0x8   :  { %20 = vsyncpa [#allocation4], 0 }
   0x9   :  { %22 = vsyncpa [#allocation4 + $0x1], 0  ;;  %s1101_s24 = smov 0   ;;  %s1103_s25 = smov 0  }
   0xa   :  { %s1105_s26 = smov 0   ;;  %s1107_s27 = smov 0  }
   0xb LB: > { %1344 = sst [smem:[#allocation16_spill]] %s1046_s26  ;;  %s1122_s28 = sadd.s32 4294967295, %s1050_s27   ;;  %s1050_s27 = sphi %s1107_s27, %s1368_s27   ;;  %s1046_s26 = sphi %s1105_s26, %s1365_s26   ;;  %s1042_s25 = sphi %s1103_s25, %s1367_s25   ;;  %s1038_s24 = sphi %s1101_s24, %s1366_s24  }
   0xc   : > { %s726_s29 = sadd.s32 4294967294, %s1050_s27   ;;  %p48_p0 = scmp.ne.s32.totalorder %s1042_s25, %s1038_s24 }
   0xd   : > { %p1337_p1 = scmp.eq.s32.totalorder %s1122_s28, 0  ;;  %p214_p3 = scmp.eq.s32.totalorder %s726_s29, 1 }
   0xe   : > { %p727_p5 = scmp.ge.s32.totalorder %s1050_s27, 1  ;;  %p221_p7 = scmp.lt.s32.totalorder %s1050_s27, 3 }
   0xf   : > { %p1131_p4 = por %p1337_p1, %p48_p0  ;;  %p1136_p6 = por %p214_p3, %p48_p0 }
  0x10   : > { %p1141_p8 = pnand %p727_p5, %p221_p7  ;;  %s1052_s10 = smov [#allocation7]  }
  0x11   : > { %s1345_s30 = scalar_select %p1131_p4, 1, 0 }
  0x12   : > { %s1346_s8 = scalar_select %p1136_p6, 1, 0 }
  0x13   : > { %s1347_s9 = scalar_select %p1141_p8, 1, 0 }
  0x14   : > { %s233_s11 = sshll.u32 %s1052_s10, 4  ;;  %p800_p9 = pneg %p1141_p8  ;;  %s234_s11 = int_to_ptr.vmem [resolvable:$true] %s233_s11 }
  0x15   : > { %s1053_s13 = smov [#allocation8]   ;;  %s877_s15 = scalar_lea.vmem %s234_s11, 256 }
  0x16   : > { %p1150_p11 = pnand %p800_p9, %p1337_p1  ;;  %s249_s14 = sshll.u32 %s1053_s13, 4  ;;  %s250_s14 = int_to_ptr.vmem [resolvable:$true] %s249_s14 }
  0x17   : > { %p878_p13 = scmp.ne.s32.totalorder %s234_s11, %s877_s15  ;;  %p885_p5 = scmp.lt.s32.totalorder %s234_s11, %s234_s11 }
  0x18   : > { %p868_p12 = pneg %p1150_p11  ;;  %p886_p7 = scmp.lt.s32.totalorder %s877_s15, %s877_s15 }
  0x1a   : > { %p880_p0 = pnand %p878_p13, %p868_p12  ;;  %p887_p10 = por %p886_p7, %p885_p5 }
  0x1c   : > { %p881_p3 = pneg %p880_p0 }
  0x1e   : > { %p888_p9 = pnand %p887_p10, %p881_p3 }
  0x20   : > { %891 = shalt.err (!%p888_p9)
}
  0x21   : > { %s1054_s16 = smov 64   ;;  %s1055_s17 = smov 4  }
  0x22   : > { %s1349_s2 = sld [smem:[#allocation18_spill]]  ;;  %s903_s20 = scalar_lea.vmem %s250_s14, 256 }
  0x23   : > { %p904_p1 = scmp.ne.s32.totalorder %s250_s14, %s903_s20  ;;  %p911_p2 = scmp.lt.s32.totalorder %s250_s14, %s250_s14 }
  0x24   : > { %p912_p6 = scmp.lt.s32.totalorder %s903_s20, %s903_s20 }
  0x25   : > { %p906_p13 = pnand %p904_p1, %p868_p12 }
  0x26   : > { %p913_p5 = por %p912_p6, %p911_p2 }
  0x27   : > { %p907_p0 = pneg %p906_p13 }
  0x28   : > { %803 = dma.hbm_to_vmem [thread:$0]  (!%p1150_p11), %s1349_s2, 256, %s234_s11, [#allocation6], %s1054_s16, %s1054_s16, %s1055_s17  }
  0x29   : > { %p914_p10 = pnand %p913_p5, %p907_p0 }
  0x2b   : > { %917 = shalt.err (!%p914_p10)
}
  0x2c   : > { %s1350_s4 = sld [smem:[#allocation19_spill]]  ;;  %s1173_s23 = sadd.s32 1, %s1050_s27  }
  0x2d   : > { %s35_s29 = sadd.s32 1, %s1046_s26  ;;  %s32_s10 = ssub.s32 %s1050_s27, %s1173_s23 }
  0x2e   : > { %p42_p1 = scmp.ne.s32.totalorder %s1046_s26, %s1042_s25  ;;  %p33_p2 = scmp.eq.s32.totalorder %s32_s10, 0 }
  0x2f   : > { %p43_p6 = scmp.eq.s32.totalorder %s1050_s27, 0  ;;  %p1351_p12 = scmp.eq.s32.totalorder %s1122_s28, 1 }
  0x30   : > { %p820_p7 = scmp.lt.s32.totalorder %s1050_s27, 2  ;;  %s266_s13 = sand.u32 1, %s1046_s26  }
  0x31   : > { %p1183_p3 = por %p1351_p12, %p42_p1  ;;  %p44_p9 = por %p43_p6, %p42_p1 }
  0x32   : > { %806 = dma.hbm_to_vmem [thread:$0]  (!%p1150_p11), %s1350_s4, 256, %s250_s14, [#allocation9], %s1054_s16, %s1054_s16, %s1055_s17  }
  0x33   : > { %s1352_s11 = scalar_select %p1183_p3, 1, 0 }
  0x34   : > { %s1189_s12 = scalar_select %p33_p2, %s1046_s26, %s35_s29  }
  0x35   : > { %s1192_s14 = sshll.u32 %s266_s13, 3  ;;  %s732_s15 = sshll.u32 %s1050_s27, 7 }
  0x36   : > { %1353 = sst [smem:[#allocation17_spill]] %s1189_s12  ;;  %s1198_s18 = scalar_lea.hbm %s1329_s0, %s732_s15 }
  0x37   : > { %s270_s19 = scalar_lea.vmem [#allocation2], %s1192_s14  ;;  %p1203_p11 = pnand %p820_p7, %p44_p9 }
  0x38   : > { %s277_s20 = sshll.u32 %s270_s19, 4  ;;  %s1210_s10 = scalar_lea.hbm %s1330_s1, %s732_s15  ;;  %s1201_s20 = int_to_ptr.vmem [resolvable:$true] %s277_s20 }
  0x39   : > { %s284_s16 = sand.u32 1, %s1050_s27   ;;  %s267_s17 = scalar_lea.sflag [#allocation3], %s266_s13 }
  0x3a   : > { %s918_s2 = scalar_lea.hbm %s1198_s18, 128  ;;  %p920_p0 = pneg %p1203_p11 }
  0x3b   : > { %p919_p13 = scmp.ne.s32.totalorder %s1198_s18, %s918_s2  ;;  %s923_s12 = scalar_lea.hbm %s1329_s0, 256 }
  0x3c   : > { %p924_p1 = scmp.lt.s32.totalorder %s1198_s18, %s1329_s0  ;;  %p925_p2 = scmp.lt.s32.totalorder %s923_s12, %s918_s2 }
  0x3d   : > { %p921_p5 = pnand %p920_p0, %p919_p13 }
  0x3e   : > { %p926_p6 = por %p925_p2, %p924_p1 }
  0x3f   : > { %p922_p10 = pneg %p921_p5 }
  0x41   : > { %p927_p12 = pnand %p926_p6, %p922_p10 }
  0x43   : > { %930 = shalt.err (!%p927_p12)
}
  0x44   : > { %s931_s13 = scalar_lea.vmem %s1201_s20, 128  ;;  %s1056_s4 = smov [#allocation2]  }
  0x45   : > { %p932_p7 = scmp.ne.s32.totalorder %s1201_s20, %s931_s13  ;;  %s936_s15 = sshll.u32 %s1056_s4, 4  ;;  %s937_s15 = int_to_ptr.vmem [resolvable:$false] %s936_s15 }
  0x46   : > { %s938_s29 = scalar_lea.vmem %s937_s15, 256  ;;  %p939_p5 = scmp.lt.s32.totalorder %s1201_s20, %s937_s15 }
  0x47   : > { %p934_p9 = pnand %p932_p7, %p920_p0  ;;  %p940_p3 = scmp.lt.s32.totalorder %s938_s29, %s931_s13 }
  0x49   : > { %p935_p13 = pneg %p934_p9  ;;  %p941_p4 = por %p940_p3, %p939_p5 }
  0x4b   : > { %p942_p1 = pnand %p941_p4, %p935_p13 }
  0x4d   : > { %945 = shalt.err (!%p942_p1)
}
  0x4e   : > { %810 = dma.hbm_to_vmem [thread:$0]  (!%p1203_p11), %s1198_s18, 128, %s1201_s20, %s267_s17  }
  0x4f   : > { %s288_s2 = scalar_lea.vmem [#allocation5], %s1192_s14  ;;  %s285_s12 = scalar_lea.sflag [#allocation6], %s284_s16 }
  0x50   : > { %s295_s26 = sshll.u32 %s288_s2, 4  ;;  %s946_s19 = scalar_lea.hbm %s1210_s10, 128  ;;  %s296_s26 = int_to_ptr.vmem [resolvable:$true] %s295_s26 }
  0x51   : > { %p947_p3 = scmp.ne.s32.totalorder %s1210_s10, %s946_s19  ;;  %s951_s4 = scalar_lea.hbm %s1330_s1, 256 }
  0x52   : > { %p952_p2 = scmp.lt.s32.totalorder %s1210_s10, %s1330_s1  ;;  %p953_p6 = scmp.lt.s32.totalorder %s951_s4, %s946_s19 }
  0x53   : > { %p949_p4 = pnand %p947_p3, %p920_p0 }
  0x54   : > { %p954_p12 = por %p953_p6, %p952_p2 }
  0x55   : > { %p950_p10 = pneg %p949_p4 }
  0x57   : > { %p955_p7 = pnand %p954_p12, %p950_p10 }
  0x59   : > { %958 = shalt.err (!%p955_p7)
}
  0x5a   : > { %s959_s14 = scalar_lea.vmem %s296_s26, 128  ;;  %s1057_s18 = smov [#allocation5]  }
  0x5b   : > { %p960_p9 = scmp.ne.s32.totalorder %s296_s26, %s959_s14  ;;  %s964_s20 = sshll.u32 %s1057_s18, 4  ;;  %s965_s20 = int_to_ptr.vmem [resolvable:$false] %s964_s20 }
  0x5c   : > { %s966_s16 = scalar_lea.vmem %s965_s20, 256  ;;  %p967_p1 = scmp.lt.s32.totalorder %s296_s26, %s965_s20 }
  0x5d   : > { %p962_p13 = pnand %p960_p9, %p920_p0  ;;  %p968_p3 = scmp.lt.s32.totalorder %s966_s16, %s959_s14 }
  0x5f   : > { %p963_p5 = pneg %p962_p13  ;;  %p969_p4 = por %p968_p3, %p967_p1 }
  0x61   : > { %p970_p8 = pnand %p969_p4, %p963_p5 }
  0x63   : > { %973 = shalt.err (!%p970_p8)
}
  0x64   : > { %813 = dma.hbm_to_vmem [thread:$0]  (!%p1203_p11), %s1210_s10, 128, %s296_s26, %s285_s12  }
  0x65   : > { %p1355_p10 = scmp.ne.s32.totalorder %s1347_s9, 0 }
  0x66   : > { %s1261_s17 = sand.u32 (!%p1355_p10), 1, %s1042_s25   ;;  %p1356_p0 = scmp.ne.s32.totalorder (!%p1355_p10), %s1345_s30, 0 }
  0x67   : > { %304 = sbr.rel (%p1355_p10) target bundleno = 463 (0x1cf), region = 44  ;;  %s736_s2 = sshll.u32 (!%p1355_p10), %s1261_s17, 3 }
  0x68   : > { %s307_s19 = scalar_lea.sflag (!%p1355_p10), [#allocation3], %s1261_s17  ;;  %s310_s22 = scalar_lea.vmem (!%p1355_p10), [#allocation2], %s736_s2 }
  0x6c   : > { %1017 = dma.done.wait (%p1356_p0), %s307_s19, 128  }
  0x6d   : > { %1019 = vsyncadd (%p1356_p0), %s307_s19, 4294967168  ;;  %s315_s21 = sand.u32 1, %s1122_s28   ;;  %s319_s9 = scalar_lea.vmem [#allocation5], %s736_s2 }
  0x6e   : > { %s316_s10 = scalar_lea.sflag [#allocation6], %s315_s21 }
  0x6f   : > { %1021 = dma.done.wait (%p1356_p0), %s316_s10, 128  }
  0x70   : > { %1023 = vsyncadd (%p1356_p0), %s316_s10, 4294967168  ;;  %p1357_p8 = scmp.eq.s32.totalorder %s1122_s28, 0 }
  0x72   : > { %1025 = dma.done.wait (%p1357_p8), [#allocation6], 256   ;;  %p1358_p11 = pmov %p1357_p8 }
  0x73   : > { %p1359_p2 = pmov %p1357_p8 }
  0x74   : > { %1027 = vsyncadd (%p1358_p11), [#allocation6], 4294967040 }
  0x75   : > { %1029 = dma.done.wait (%p1359_p2), [#allocation9], 256   ;;  %p1360_p6 = pmov %p1359_p2 }
  0x76   : > { %v1058_v0 = vmov 0.0   ;;  %vm1059_vm0 = vmmov 0   ;;  %v862_v1 = vld [vmem:[#allocation7 + $0x8] sm:$0xff]   ;;  %v863_v2 = vld [vmem:[#allocation7] sm:$0xff]   ;;  %v864_v4 = vld [vmem:[#allocation8 + $0x8] sm:$0xff]   ;;  %vm399_vm1 = vcmask 261120  }
  0x77   : > { %1031 = vsyncadd (%p1360_p6), [#allocation9], 4294967040  ;;  %770 = vmatprep.subr.bf16.mxu0 %v1058_v0  ;;  %774 = vmatprep.mubr.msk.bf16.mxu0 %vm1059_vm0, %v1058_v0  ;;  %v374_v3 = vld [vmem:[%s310_s22] sm:$0xff]  ;;  %v865_v6 = vld [vmem:[#allocation8] sm:$0xff]   ;;  %s740_s4 = sshll.u32 %s1261_s17, 2  ;;  %vm565_vm2 = vcmask 257024  }
  0x78   : > { %778 = vmatprep.subr.bf16.mxu1 %v1058_v0  ;;  %782 = vmatprep.mubr.msk.bf16.mxu1 %vm1059_vm0, %v1058_v0  ;;  %v375_v5 = vpack.c.bf16 %v374_v3, %v374_v3  ;;  %v496_v7 = vld [vmem:[%s319_s9] sm:$0xff]  ;;  %v743_v9 = vld [vmem:[%s1332_s3] ss:$0 sm:$0xff]  ;;  %s756_s15 = sshll.u32 %s1122_s28, 6  ;;  %s367_s29 = scalar_lea.vmem [#allocation10], %s740_s4 }
  0x79   : > { %771 = vmatpush3.bf16.msra.mxu0 %v862_v1  ;;  %779 = vmatpush3.bf16.msra.mxu1 %v864_v4  ;;  %v497_v8 = vpack.c.bf16 %v496_v7, %v496_v7  ;;  %v751_v13 = vld [vmem:[%s1334_s5] ss:$0 sm:$0xff]  ;;  %s589_s14 = sshll.u32 %s367_s29, 4  ;;  %s587_s16 = scalar_lea.hbm %s1336_s7, %s756_s15  ;;  %s590_s14 = int_to_ptr.vmem [resolvable:$true] %s589_s14 }
  0x7a   : > { %772 = vmatprep.subr.bf16.mxu0 %v1058_v0  ;;  %780 = vmatprep.subr.bf16.mxu1 %v1058_v0  ;;  %s573_s2 = scalar_lea.sflag [#allocation4], %s1261_s17  ;;  %s974_s19 = scalar_lea.vmem %s590_s14, 64 }
  0x7b   : > { %p975_p12 = scmp.ne.s32.totalorder %s590_s14, %s974_s19  ;;  %p1361_p7 = scmp.ne.s32.totalorder %s1352_s11, 0 }
  0x7c   : > { %s1060_s22 = smov [#allocation10]  }
  0x7d   : > { %773 = vmatpush3.bf16.msra.mxu0 %v863_v2  ;;  %781 = vmatpush3.bf16.msra.mxu1 %v865_v6  ;;  %p976_p9 = pnand %p975_p12, %p1361_p7  ;;  %s978_s21 = sshll.u32 %s1060_s22, 4  ;;  %s979_s21 = int_to_ptr.vmem [resolvable:$false] %s978_s21 }
  0x7e   : > { %s980_s10 = scalar_lea.vmem %s979_s21, 128  ;;  %p981_p5 = scmp.lt.s32.totalorder %s590_s14, %s979_s21 }
  0x7f   : > { %p977_p13 = pneg %p976_p9  ;;  %p982_p1 = scmp.lt.s32.totalorder %s980_s10, %s974_s19 }
  0x80   : > { %775 = vmatmul.mubr.msk.bf16.vlgmr.msra.gmra.mxu0 %vm399_vm1, %v375_v5  ;;  %783 = vmatmul.mubr.msk.bf16.vlgmr.msra.gmra.mxu1 %vm399_vm1, %v497_v8 }
  0x81   : > { %p983_p3 = por %p982_p1, %p981_p5 }
  0x83   : > { %p984_p4 = pnand %p983_p3, %p977_p13 }
 0x140   : > { %v437_v10 = vpop.f32.mrf.mxu0  ;;  %v558_v14 = vpop.f32.mrf.mxu1 }
 0x141   : > { %v438_v11 = vadd.f32 %v743_v9, %v437_v10  ;;  %v559_v16 = vadd.f32 %v751_v13, %v558_v14 }
 0x142   : > { %v776_v12 = vpop.f32.mrf.mxu0  ;;  %v784_v17 = vpop.f32.mrf.mxu1 }
 0x143   : > { %443 = vxpose.xlu0.b32.start.end [1/1] (short) (narrow) %v438_v11, 32  ;;  %v564_v20 = vpack.c.bf16 %v559_v16, %v559_v16 }
 0x144   : > { %v440_v15 = vpop.f32.mrf.mxu0  ;;  %v561_v19 = vpop.f32.mrf.mxu1 }
 0x145   : > { %566 = vst.msk [vmem:[%s367_s29] sm:$0xf] %vm565_vm2, %v564_v20 }
 0x146   : > { %v777_v18 = vpop.f32.mrf.mxu0  ;;  %v785_v21 = vpop.f32.mrf.mxu1 }
 0x147   : > { %987 = shalt.err (!%p984_p4)
}
 0x148   : > { %s988_s9 = scalar_lea.hbm %s587_s16, 64  ;;  %s992_s26 = scalar_lea.hbm %s1336_s7, 128 }
 0x149   : > { %p989_p10 = scmp.ne.s32.totalorder %s587_s16, %s988_s9  ;;  %p993_p11 = scmp.lt.s32.totalorder %s587_s16, %s1336_s7 }
 0x14a   : > { %p994_p2 = scmp.lt.s32.totalorder %s992_s26, %s988_s9 }
 0x14b   : > { %p990_p0 = pnand %p989_p10, %p1361_p7 }
 0x14c   : > { %p995_p6 = por %p994_p2, %p993_p11 }
 0x14d   : > { %p991_p8 = pneg %p990_p0 }
 0x14f   : > { %p996_p12 = pnand %p995_p6, %p991_p8 }
 0x151   : > { %999 = shalt.err (!%p996_p12)
}
 0x152   : > { %798 = dma.vmem_to_hbm [thread:$0]  (%p1361_p7), %s590_s14, 64, %s587_s16, %s573_s2   ;;  %vm491_vm3 = vcmask 60416  }
 0x153   : > { %p368_p9 = scmp.lt.s32.totalorder %s1122_s28, 1 }
 0x155   : > { %s1370_s28 = smov (!%p368_p9, %s1122_s28), 1 }
 0x156   : > { %s759_s4 = sshll.u32 %s1370_s28, 4 }
 0x157   : > { %s372_s18 = scalar_lea.vmem %s1335_s6, %s759_s4 }
 0x1bf   : > { %v459_v22 = vpop.trf.xlu0 }
 0x1c0   : > { %v760_v23 = vpack.c.bf16 %v459_v22, %v459_v22 }
 0x1c2   : > { %492 = vst.msk [vmem:[%s372_s18] sm:$0xf] %vm491_vm3, %v760_v23 }
 0x1c3   : > { %v460_v24 = vpop.trf.xlu0 }
 0x1c4   : > { %v761_v25 = vpack.c.bf16 %v460_v24, %v460_v24 }
 0x1c6   : > { %493 = vst.msk [vmem:[%s372_s18 + $0x4] sm:$0xf] %vm491_vm3, %v761_v25 }
 0x1c7   : > { %v461_v26 = vpop.trf.xlu0 }
 0x1c8   : > { %v762_v27 = vpack.c.bf16 %v461_v26, %v461_v26 }
 0x1ca   : > { %494 = vst.msk [vmem:[%s372_s18 + $0x8] sm:$0xf] %vm491_vm3, %v762_v27 }
 0x1cb   : > { %v462_v28 = vpop.trf.xlu0 }
 0x1cc   : > { %v763_v29 = vpack.c.bf16 %v462_v28, %v462_v28 }
 0x1ce   : > { %495 = vst.msk [vmem:[%s372_s18 + $0xc] sm:$0xf] %vm491_vm3, %v763_v29 }
 0x1cf PF: > { %s609_s28 = sand.u32 1, %s1038_s24   ;;  %p1362_p7 = scmp.ne.s32.totalorder %s1346_s8, 0 }
 0x1d0   : > { %p1363_p13 = scmp.ge.s32.totalorder %s1050_s27, 2  ;;  %s610_s11 = scalar_lea.sflag [#allocation4], %s609_s28 }
 0x1d2   : > { %p815_p5 = pnand %p1363_p13, %p1362_p7 }
 0x1d4   : > { %p816_p1 = pneg %p815_p5 }
 0x1d6   : > { %1033 = dma.done.wait (%p816_p1), %s610_s11, 64  }
 0x1d7   : > { %1035 = vsyncadd (%p816_p1), %s610_s11, 4294967232  ;;  %s1364_s14 = sld [smem:[#allocation16_spill]]  ;;  %p25_p3 = scmp.ge.s32.totalorder %s1173_s23, 4  }
 0x1d8   : > { %s1365_s26 = sld [smem:[#allocation17_spill]]  ;;  %s1366_s24 = smov %s1042_s25 }
 0x1d9   : > { %s1368_s27 = smov %s1173_s23  ;;  %27 = sbr.rel (!%p25_p3) target bundleno = 11 (0xb), region = 122 }
 0x1dd   : > { %s1367_s25 = smov %s1364_s14 }
 0x1de   :  { %615 = vsyncpa [#allocation3], 1 }
 0x1df   :  { %617 = vsyncpa [#allocation3 + $0x1], 1 }
 0x1e0   :  { %618 = vsyncpa [#allocation6], 1 }
 0x1e1   :  { %620 = vsyncpa [#allocation6 + $0x1], 1 }
 0x1e2   :  { %621 = vsyncpa [#allocation9], 1 }
 0x1e3   :  { %622 = vsyncpa [#allocation4], 1 }
 0x1e4   :  { %624 = vsyncpa [#allocation4 + $0x1], 1 }

</bundles_post_ra>
